<compile_context>
chip_gen: v7x
topology: tpu7x:2x2x1
jax: 0.10.0
libtpu: 0.0.40
codegen_flags: <defaults>
</compile_context>

<pallas_src>
import functools

import jax
import jax.numpy as jnp
from jax.experimental import pallas as pl
from jax.experimental.pallas import tpu as pltpu


# -----------------------------------------------------------------------------
# Pallas kernel: fused MLP head over one batch tile
#   h   = ReLU(ue @ W1u + me @ W1m + g @ W1g + b1)        (fused concat)
#   y   = sum(h * w2_row, lanes) + b2                      (VPU mul + XLU reduce)
#   out = sigmoid(y) * scale + offset                      (EUP exp + recip)
# -----------------------------------------------------------------------------
def _mlp_head_kernel(scalars_ref,                 # SMEM [3]: b2, scale, offset
                     ue_ref, me_ref, g_ref,       # [TB, F], [TB, F], [TB, G]
                     w1u_ref, w1m_ref, w1g_ref,   # [F, H], [F, H], [G, H]
                     b1_ref, w2_ref,              # [1, H], [1, H]
                     out_ref):                    # [TB, 1]
    h = jnp.dot(ue_ref[...], w1u_ref[...], preferred_element_type=jnp.float32)
    h = h + jnp.dot(me_ref[...], w1m_ref[...], preferred_element_type=jnp.float32)
    h = h + jnp.dot(g_ref[...], w1g_ref[...], preferred_element_type=jnp.float32)
    h = jnp.maximum(h + b1_ref[...], 0.0)                       # bias + ReLU (VPU)

    # Second "matmul" has N=1: do it on the VPU + cross-lane reduce instead of MXU.
    y = jnp.sum(h * w2_ref[...], axis=-1, keepdims=True) + scalars_ref[0]

    # sigmoid: exp and approx reciprocal both issue on the (otherwise idle) EUP.
    out = pl.reciprocal(1.0 + jnp.exp(-y), approx=True)
    # minmax rescale folded into scale/offset (identity when minmax is None).
    out = out * scalars_ref[1] + scalars_ref[2]
    out_ref[...] = out.astype(out_ref.dtype)


def _round_up(x, m):
    return (x + m - 1) // m * m


def _pad_rows(x, target_rows):
    pad = target_rows - x.shape[0]
    if pad == 0:
        return x
    return jnp.pad(x, ((0, pad), (0, 0)))


def mlp_head(user_emb, movie_emb, genres, w1, b1, w2, b2,
             minmax=None, tile_batch=512, feature_dtype=jnp.float32):
    """Fused Linear->ReLU->Linear->sigmoid->minmax head.

    user_emb  [B, F], movie_emb [B, F], genres [B, G]
    w1 [2F+G, H], b1 [1, H], w2 [H, 1], b2 [1, 1]
    """
    B, F = user_emb.shape
    G = genres.shape[1]
    H = w1.shape[1]
    n_input = 2 * F + G

    # Batch tiling: TB multiple of 8 (f32 sublane); pad B to a whole number of
    # tiles and slice the result back (padded rows are discarded).
    TB = min(int(tile_batch), _round_up(B, 8))
    B_pad = _round_up(B, TB)
    num_tiles = B_pad // TB

    # Optional narrow dtype for the streamed features / W1 (bf16 on v6e/v7x
    # halves HBM bytes; accumulation stays f32).  Default f32 keeps exact
    # parity with the PyTorch module.
    ue = _pad_rows(user_emb.astype(feature_dtype), B_pad)
    me = _pad_rows(movie_emb.astype(feature_dtype), B_pad)
    ge = _pad_rows(genres.astype(feature_dtype), B_pad)

    # Pre-split W1 by input block so the concat never has to exist.
    w1 = w1.astype(feature_dtype)
    w1u = w1[:F, :]
    w1m = w1[F:2 * F, :]
    w1g = w1[2 * F:, :]
    b1 = b1.reshape(1, H).astype(jnp.float32)
    w2_row = w2.reshape(H, 1).T.astype(jnp.float32)             # [1, H]

    # SMEM scalars: [b2, scale, offset]; minmax folds into scale/offset so a
    # different (min, max) never retraces.
    if minmax is not None:
        scale = float(minmax[1]) - float(minmax[0]) + 1.0
        offset = float(minmax[0]) - 0.5
    else:
        scale, offset = 1.0, 0.0
    scalars = jnp.concatenate([
        jnp.asarray(b2, jnp.float32).reshape(1),
        jnp.array([scale, offset], jnp.float32),
    ])

    feat_bytes = jnp.dtype(feature_dtype).itemsize
    cost = pl.CostEstimate(
        flops=2 * B_pad * n_input * H + 3 * B_pad * H,
        transcendentals=2 * B_pad,
        bytes_accessed=(B_pad * n_input * feat_bytes        # feature streams
                        + B_pad * 4                          # output
                        + n_input * H * feat_bytes           # W1
                        + 2 * H * 4 + 3 * 4),                # b1, w2, scalars
    )

    grid_spec = pltpu.PrefetchScalarGridSpec(
        num_scalar_prefetch=1,
        grid=(num_tiles,),
        in_specs=[
            pl.BlockSpec((TB, F), lambda i, s: (i, 0)),      # user_emb tile
            pl.BlockSpec((TB, F), lambda i, s: (i, 0)),      # movie_emb tile
            pl.BlockSpec((TB, G), lambda i, s: (i, 0)),      # genres tile
            pl.BlockSpec((F, H), lambda i, s: (0, 0)),       # W1[:F]   (resident)
            pl.BlockSpec((F, H), lambda i, s: (0, 0)),       # W1[F:2F] (resident)
            pl.BlockSpec((G, H), lambda i, s: (0, 0)),       # W1[2F:]  (resident)
            pl.BlockSpec((1, H), lambda i, s: (0, 0)),       # b1       (resident)
            pl.BlockSpec((1, H), lambda i, s: (0, 0)),       # w2 row   (resident)
        ],
        out_specs=pl.BlockSpec((TB, 1), lambda i, s: (i, 0)),
    )

    out = pl.pallas_call(
        _mlp_head_kernel,
        out_shape=jax.ShapeDtypeStruct((B_pad, 1), jnp.float32),
        grid_spec=grid_spec,
        compiler_params=pltpu.CompilerParams(
            dimension_semantics=("parallel",),               # megacore / v7x 2-TC split
            vmem_limit_bytes=32 * 1024 * 1024,               # safe on v5e..v7x
        ),
        cost_estimate=cost,
    )(scalars, ue, me, ge, w1u, w1m, w1g, b1, w2_row)

    return out[:B]


# -----------------------------------------------------------------------------
# EmbeddingNet parameters + forward
# -----------------------------------------------------------------------------
def xavier_uniform(key, shape):
    fan_in, fan_out = shape
    limit = jnp.sqrt(6.0 / (fan_in + fan_out))
    return jax.random.uniform(key, shape, jnp.float32, -limit, limit)


def init_embedding_net(key, n_users, n_movies, n_genres, n_factors, hidden):
    k_u, k_m, k_w1, k_w2 = jax.random.split(key, 4)
    n_input = 2 * n_factors + n_genres
    params = {
        "u": jax.random.uniform(k_u, (n_users, n_factors), jnp.float32, -0.05, 0.05),
        "m": jax.random.uniform(k_m, (n_movies, n_factors), jnp.float32, -0.05, 0.05),
        # nn.Linear stores weight as [out, in]; we keep [in, out] for x @ W.
        "w1": xavier_uniform(k_w1, (n_input, hidden)),
        "b1": jnp.full((1, hidden), 0.01, jnp.float32),
        "w2": xavier_uniform(k_w2, (hidden, 1)),
        "b2": jnp.full((1, 1), 0.01, jnp.float32),
    }
    return params


def embedding_net_forward(params, users, movies, genres, minmax=None,
                          tile_batch=512, feature_dtype=jnp.float32):
    # Embedding lookups stay in XLA (no rectangular tile for a row gather).
    user_emb = jnp.take(params["u"], users, axis=0)     # [B, n_factors]
    movie_emb = jnp.take(params["m"], movies, axis=0)   # [B, n_factors]
    # Concat + Linear -> ReLU -> Linear -> sigmoid -> minmax all fused in Pallas.
    return mlp_head(user_emb, movie_emb, genres.astype(jnp.float32),
                    params["w1"], params["b1"], params["w2"], params["b2"],
                    minmax=minmax, tile_batch=tile_batch,
                    feature_dtype=feature_dtype)


# -----------------------------------------------------------------------------
# Pure-JAX reference for a sanity check
# -----------------------------------------------------------------------------
def reference_forward(params, users, movies, genres, minmax=None):
    user_emb = jnp.take(params["u"], users, axis=0)
    movie_emb = jnp.take(params["m"], movies, axis=0)
    x = jnp.concatenate([user_emb, movie_emb, genres.astype(jnp.float32)], axis=1)
    h = jnp.maximum(x @ params["w1"] + params["b1"], 0.0)
    out = jax.nn.sigmoid(h @ params["w2"] + params["b2"])
    if minmax is not None:
        mn, mx = minmax
        out = out * (mx - mn + 1.0) + mn - 0.5
    return out


if __name__ == "__main__":
    # Small, forward-consistent shapes.
    n_users, n_movies, n_genres = 32, 48, 4
    n_factors, hidden = 16, 32
    batch = 8
    minmax = (1.0, 5.0)

    key = jax.random.PRNGKey(0)
    k_params, k_u, k_m, k_g = jax.random.split(key, 4)

    params = init_embedding_net(k_params, n_users, n_movies, n_genres,
                                n_factors, hidden)

    users = jax.random.randint(k_u, (batch,), 0, n_users)
    movies = jax.random.randint(k_m, (batch,), 0, n_movies)
    genres = jax.random.uniform(k_g, (batch, n_genres), jnp.float32)

    out = embedding_net_forward(params, users, movies, genres, minmax=minmax)
    out = jax.block_until_ready(out)

    ref = reference_forward(params, users, movies, genres, minmax=minmax)
    assert out.shape == (batch, 1)
    # Slightly loose tolerance: sigmoid uses the EUP approx reciprocal.
    assert jnp.allclose(out, ref, atol=5e-3, rtol=5e-3), (out, ref)

    print("KERNEL_OK")
</pallas_src>

<mosaic_0001>
module attributes {stable_mosaic.version = 11 : i64} {
  func.func @_mlp_head_kernel(%arg0: i32, %arg1: memref<3xf32, #tpu.memory_space<smem>>, %arg2: memref<8x16xf32, #tpu.memory_space<vmem>>, %arg3: memref<8x16xf32, #tpu.memory_space<vmem>>, %arg4: memref<8x4xf32, #tpu.memory_space<vmem>>, %arg5: memref<16x32xf32, #tpu.memory_space<vmem>>, %arg6: memref<16x32xf32, #tpu.memory_space<vmem>>, %arg7: memref<4x32xf32, #tpu.memory_space<vmem>>, %arg8: memref<1x32xf32, #tpu.memory_space<vmem>>, %arg9: memref<1x32xf32, #tpu.memory_space<vmem>>, %arg10: memref<8x1xf32, #tpu.memory_space<vmem>>) attributes {dimension_semantics = [#tpu.dimension_semantics<parallel>], iteration_bounds = array<i64: 1>, scalar_prefetch = 1 : i64, scratch_operands = 0 : i64, tpu.core_type = #tpu.core_type<tc>, window_params = [{transform_indices = @transform_0, window_bounds = array<i64: 8, 16>}, {transform_indices = @transform_1, window_bounds = array<i64: 8, 16>}, {transform_indices = @transform_2, window_bounds = array<i64: 8, 4>}, {pipeline_mode = #tpu.pipeline_mode<synchronous>, transform_indices = @transform_3, window_bounds = array<i64: 16, 32>}, {pipeline_mode = #tpu.pipeline_mode<synchronous>, transform_indices = @transform_4, window_bounds = array<i64: 16, 32>}, {pipeline_mode = #tpu.pipeline_mode<synchronous>, transform_indices = @transform_5, window_bounds = array<i64: 4, 32>}, {pipeline_mode = #tpu.pipeline_mode<synchronous>, transform_indices = @transform_6, window_bounds = array<i64: 1, 32>}, {pipeline_mode = #tpu.pipeline_mode<synchronous>, transform_indices = @transform_7, window_bounds = array<i64: 1, 32>}, {transform_indices = @transform_8, window_bounds = array<i64: 8, 1>}]} {
    %c0 = arith.constant 0 : index
    %c0_0 = arith.constant 0 : index
    %0 = vector.load %arg2[%c0, %c0_0] : memref<8x16xf32, #tpu.memory_space<vmem>>, vector<8x16xf32>
    %c0_1 = arith.constant 0 : index
    %c0_2 = arith.constant 0 : index
    %1 = vector.load %arg5[%c0_1, %c0_2] : memref<16x32xf32, #tpu.memory_space<vmem>>, vector<16x32xf32>
    %cst = arith.constant dense<0.000000e+00> : vector<8x32xf32>
    %2 = tpu.matmul %0, %1, %cst {dimension_numbers = #tpu.dot_dimension_numbers<[1], [0], [0], [1], [0, 0, 1, 1], [], []>} : vector<8x16xf32>, vector<16x32xf32>, vector<8x32xf32> -> vector<8x32xf32>
    %c0_3 = arith.constant 0 : index
    %c0_4 = arith.constant 0 : index
    %3 = vector.load %arg3[%c0_3, %c0_4] : memref<8x16xf32, #tpu.memory_space<vmem>>, vector<8x16xf32>
    %c0_5 = arith.constant 0 : index
    %c0_6 = arith.constant 0 : index
    %4 = vector.load %arg6[%c0_5, %c0_6] : memref<16x32xf32, #tpu.memory_space<vmem>>, vector<16x32xf32>
    %cst_7 = arith.constant dense<0.000000e+00> : vector<8x32xf32>
    %5 = tpu.matmul %3, %4, %cst_7 {dimension_numbers = #tpu.dot_dimension_numbers<[1], [0], [0], [1], [0, 0, 1, 1], [], []>} : vector<8x16xf32>, vector<16x32xf32>, vector<8x32xf32> -> vector<8x32xf32>
    %6 = arith.addf %2, %5 : vector<8x32xf32>
    %c0_8 = arith.constant 0 : index
    %c0_9 = arith.constant 0 : index
    %7 = vector.load %arg4[%c0_8, %c0_9] : memref<8x4xf32, #tpu.memory_space<vmem>>, vector<8x4xf32>
    %c0_10 = arith.constant 0 : index
    %c0_11 = arith.constant 0 : index
    %8 = vector.load %arg7[%c0_10, %c0_11] : memref<4x32xf32, #tpu.memory_space<vmem>>, vector<4x32xf32>
    %cst_12 = arith.constant dense<0.000000e+00> : vector<8x32xf32>
    %9 = tpu.matmul %7, %8, %cst_12 {dimension_numbers = #tpu.dot_dimension_numbers<[1], [0], [0], [1], [0, 0, 1, 1], [], []>} : vector<8x4xf32>, vector<4x32xf32>, vector<8x32xf32> -> vector<8x32xf32>
    %10 = arith.addf %6, %9 : vector<8x32xf32>
    %c0_13 = arith.constant 0 : index
    %c0_14 = arith.constant 0 : index
    %11 = vector.load %arg8[%c0_13, %c0_14] : memref<1x32xf32, #tpu.memory_space<vmem>>, vector<1x32xf32>
    %12 = vector.broadcast %11 : vector<1x32xf32> to vector<8x32xf32>
    %13 = arith.addf %10, %12 : vector<8x32xf32>
    %cst_15 = arith.constant 0.000000e+00 : f32
    %14 = vector.broadcast %cst_15 : f32 to vector<8x32xf32>
    %15 = arith.maximumf %13, %14 : vector<8x32xf32>
    %c0_16 = arith.constant 0 : index
    %c0_17 = arith.constant 0 : index
    %16 = vector.load %arg9[%c0_16, %c0_17] : memref<1x32xf32, #tpu.memory_space<vmem>>, vector<1x32xf32>
    %17 = vector.broadcast %16 : vector<1x32xf32> to vector<8x32xf32>
    %18 = arith.mulf %15, %17 : vector<8x32xf32>
    %cst_18 = arith.constant dense<0.000000e+00> : vector<8xf32>
    %19 = vector.multi_reduction <add>, %18, %cst_18 [1] : vector<8x32xf32> to vector<8xf32>
    %20 = vector.shape_cast %19 : vector<8xf32> to vector<8x1xf32>
    %c0_19 = arith.constant 0 : index
    %21 = memref.load %arg1[%c0_19] : memref<3xf32, #tpu.memory_space<smem>>
    %22 = vector.broadcast %21 : f32 to vector<8x1xf32>
    %23 = arith.addf %20, %22 : vector<8x1xf32>
    %cst_20 = arith.constant 0.000000e+00 : f32
    %24 = vector.broadcast %cst_20 : f32 to vector<8x1xf32>
    %25 = arith.subf %24, %23 : vector<8x1xf32>
    %26 = math.exp %25 : vector<8x1xf32>
    %cst_21 = arith.constant 1.000000e+00 : f32
    %27 = vector.broadcast %cst_21 : f32 to vector<8x1xf32>
    %28 = arith.addf %27, %26 : vector<8x1xf32>
    %29 = tpu.reciprocal %28 {approx = true} : vector<8x1xf32> -> vector<8x1xf32>
    %c1 = arith.constant 1 : index
    %30 = memref.load %arg1[%c1] : memref<3xf32, #tpu.memory_space<smem>>
    %31 = vector.broadcast %30 : f32 to vector<8x1xf32>
    %32 = arith.mulf %29, %31 : vector<8x1xf32>
    %c2 = arith.constant 2 : index
    %33 = memref.load %arg1[%c2] : memref<3xf32, #tpu.memory_space<smem>>
    %34 = vector.broadcast %33 : f32 to vector<8x1xf32>
    %35 = arith.addf %32, %34 : vector<8x1xf32>
    %c0_22 = arith.constant 0 : index
    %c0_23 = arith.constant 0 : index
    %36 = vector.load %arg10[%c0_22, %c0_23] : memref<8x1xf32, #tpu.memory_space<vmem>>, vector<8x1xf32>
    tpu.vector_store %arg10[%c0_22, %c0_23], %35 {strides = array<i32>} : memref<8x1xf32, #tpu.memory_space<vmem>>, vector<8x1xf32>,
    return
  }
  func.func @transform_0(%arg0: i32, %arg1: memref<3xf32, #tpu.memory_space<smem>>) -> (i32, i32) {
    %c0_i32 = arith.constant 0 : i32
    %c0_i32_0 = arith.constant 0 : i32
    return %arg0, %c0_i32 : i32, i32
  }
  func.func @transform_1(%arg0: i32, %arg1: memref<3xf32, #tpu.memory_space<smem>>) -> (i32, i32) {
    %c0_i32 = arith.constant 0 : i32
    %c0_i32_0 = arith.constant 0 : i32
    return %arg0, %c0_i32 : i32, i32
  }
  func.func @transform_2(%arg0: i32, %arg1: memref<3xf32, #tpu.memory_space<smem>>) -> (i32, i32) {
    %c0_i32 = arith.constant 0 : i32
    %c0_i32_0 = arith.constant 0 : i32
    return %arg0, %c0_i32 : i32, i32
  }
  func.func @transform_3(%arg0: i32, %arg1: memref<3xf32, #tpu.memory_space<smem>>) -> (i32, i32) {
    %c0_i32 = arith.constant 0 : i32
    %c0_i32_0 = arith.constant 0 : i32
    %c0_i32_1 = arith.constant 0 : i32
    return %c0_i32, %c0_i32_0 : i32, i32
  }
  func.func @transform_4(%arg0: i32, %arg1: memref<3xf32, #tpu.memory_space<smem>>) -> (i32, i32) {
    %c0_i32 = arith.constant 0 : i32
    %c0_i32_0 = arith.constant 0 : i32
    %c0_i32_1 = arith.constant 0 : i32
    return %c0_i32, %c0_i32_0 : i32, i32
  }
  func.func @transform_5(%arg0: i32, %arg1: memref<3xf32, #tpu.memory_space<smem>>) -> (i32, i32) {
    %c0_i32 = arith.constant 0 : i32
    %c0_i32_0 = arith.constant 0 : i32
    %c0_i32_1 = arith.constant 0 : i32
    return %c0_i32, %c0_i32_0 : i32, i32
  }
  func.func @transform_6(%arg0: i32, %arg1: memref<3xf32, #tpu.memory_space<smem>>) -> (i32, i32) {
    %c0_i32 = arith.constant 0 : i32
    %c0_i32_0 = arith.constant 0 : i32
    %c0_i32_1 = arith.constant 0 : i32
    return %c0_i32, %c0_i32_0 : i32, i32
  }
  func.func @transform_7(%arg0: i32, %arg1: memref<3xf32, #tpu.memory_space<smem>>) -> (i32, i32) {
    %c0_i32 = arith.constant 0 : i32
    %c0_i32_0 = arith.constant 0 : i32
    %c0_i32_1 = arith.constant 0 : i32
    return %c0_i32, %c0_i32_0 : i32, i32
  }
  func.func @transform_8(%arg0: i32, %arg1: memref<3xf32, #tpu.memory_space<smem>>) -> (i32, i32) {
    %c0_i32 = arith.constant 0 : i32
    %c0_i32_0 = arith.constant 0 : i32
    return %arg0, %c0_i32 : i32, i32
  }
}

</mosaic_0001>

<bundles_post_ra>
// kernel: tpu_custom_call.1
= control target key start
LH: loop header
LB: loop body
LE: loop exit
PB: predicated region body
PF: predicated region fallthrough
CT: control target
= control target key end

     0   :  { %s573_s0 = inlined_call_operand.vmem [shape: f32[3], index: 0, kind: input, shape index: {}]   ;;  %s574_s1 = inlined_call_operand.vmem [shape: f32[8,16], index: 1, kind: input, shape index: {}]   ;;  %s575_s2 = inlined_call_operand.hbm [shape: f32[8,16], index: 2, kind: input, shape index: {}]   ;;  %s576_s3 = inlined_call_operand.vmem [shape: f32[8,4], index: 3, kind: input, shape index: {}]   ;;  %s577_s4 = inlined_call_operand.vmem [shape: f32[16,32], index: 4, kind: input, shape index: {}]   ;;  %s578_s5 = inlined_call_operand.hbm [shape: f32[16,32], index: 5, kind: input, shape index: {}]   ;;  %s579_s6 = inlined_call_operand.vmem [shape: f32[4,32], index: 6, kind: input, shape index: {}]   ;;  %s580_s7 = inlined_call_operand.vmem [shape: f32[1,32], index: 7, kind: input, shape index: {}]   ;;  %s581_s8 = inlined_call_operand.vmem [shape: f32[1,32], index: 8, kind: input, shape index: {}]   ;;  %s582_s9 = inlined_call_operand.vmem [shape: f32[8,1], index: 9, kind: output, shape index: {}]  }
   0x1   :  { %s14_s11 = sshll.u32 %s573_s0, 4  ;;  %s15_s11 = int_to_ptr.vmem [resolvable:$true] %s14_s11 }
   0x2   :  { %s392_s12 = scalar_lea.vmem %s15_s11, 16  ;;  %p397_p1 = scmp.lt.s32.totalorder %s15_s11, %s15_s11 }
   0x3   :  { %p393_p0 = scmp.ne.s32.totalorder %s15_s11, %s392_s12  ;;  %p398_p2 = scmp.lt.s32.totalorder %s392_s12, %s392_s12 }
   0x5   :  { %p399_p3 = por %p398_p2, %p397_p1 }
   0x7   :  { %p400_p4 = pnand %p399_p3, %p393_p0 }
   0x9   :  { %403 = shalt.err (!%p400_p4)  }
   0xa   :  { %s454_s13 = smov [#allocation3]  }
   0xb   :  { %17 = dma.vmem_to_smem %s15_s11, 16, %s454_s13, [#allocation2] }
   0xc   :  { %448 = dma.done.wait [#allocation2], 16 }
   0xd   :  { %449 = vsyncadd [#allocation2], 4294967280 }
   0xe   :  { %19 = sfence }
   0xf   :  { %20 = vsyncpa [#allocation5], 0 }
  0x10   :  { %21 = vsyncpa [#allocation7], 0  ;;  %s455_s14 = smov [#allocation4]   ;;  %s456_s16 = smov [#allocation6]  }
  0x11   :  { %s30_s15 = sshll.u32 %s455_s14, 4  ;;  %s43_s17 = sshll.u32 %s456_s16, 4  ;;  %s31_s15 = int_to_ptr.vmem [resolvable:$true] %s30_s15  ;;  %s515_s17 = int_to_ptr.vmem [resolvable:$true] %s43_s17 }
  0x12   :  { %s404_s19 = scalar_lea.hbm %s575_s2, 128 }
  0x13   :  { %p405_p5 = scmp.ne.s32.totalorder %s575_s2, %s404_s19  ;;  %p408_p6 = scmp.lt.u32.totalorder %s404_s19, %s575_s2 }
  0x15   :  { %p410_p7 = pnand %p408_p6, %p405_p5 }
  0x17   :  { %413 = shalt.err (!%p410_p7)
}
  0x18   :  { %s414_s24 = scalar_lea.vmem %s31_s15, 128  ;;  %p419_p9 = scmp.lt.s32.totalorder %s31_s15, %s31_s15 }
  0x19   :  { %p415_p8 = scmp.ne.s32.totalorder %s31_s15, %s414_s24  ;;  %p420_p10 = scmp.lt.s32.totalorder %s414_s24, %s414_s24 }
  0x1b   :  { %p421_p11 = por %p420_p10, %p419_p9 }
  0x1d   :  { %p422_p12 = pnand %p421_p11, %p415_p8 }
  0x1f   :  { %425 = shalt.err (!%p422_p12)
}
  0x20   :  { %33 = dma.hbm_to_vmem [thread:$0]  %s575_s2, 128, %s31_s15, [#allocation5]  }
  0x21   :  { %s426_s29 = scalar_lea.hbm %s578_s5, 256 }
  0x22   :  { %p427_p13 = scmp.ne.s32.totalorder %s578_s5, %s426_s29  ;;  %p430_p0 = scmp.lt.u32.totalorder %s426_s29, %s578_s5 }
  0x24   :  { %p432_p1 = pnand %p430_p0, %p427_p13 }
  0x26   :  { %435 = shalt.err (!%p432_p1)
}
  0x27   :  { %s436_s13 = scalar_lea.vmem %s515_s17, 256  ;;  %p441_p3 = scmp.lt.s32.totalorder %s515_s17, %s515_s17 }
  0x28   :  { %p437_p2 = scmp.ne.s32.totalorder %s515_s17, %s436_s13  ;;  %p442_p4 = scmp.lt.s32.totalorder %s436_s13, %s436_s13 }
  0x2a   :  { %p443_p5 = por %p442_p4, %p441_p3 }
  0x2c   :  { %p444_p6 = pnand %p443_p5, %p437_p2 }
  0x2e   :  { %447 = shalt.err (!%p444_p6)
}
  0x2f   :  { %s457_s2 = smov 128   ;;  %s458_s14 = smov 8  }
  0x30   :  { %49 = dma.hbm_to_vmem [thread:$0]  %s578_s5, 256, %s515_s17, [#allocation7], %s457_s2, %s457_s2, %s458_s14  }
  0x31   :  { %450 = dma.done.wait [#allocation5], 128  }
  0x32   :  { %451 = vsyncadd [#allocation5], 4294967168 }
  0x33   :  { %452 = dma.done.wait [#allocation7], 256  }
  0x34   :  { %453 = vsyncadd [#allocation7], 4294967040  ;;  %v459_v0 = vmov 0.0|0.0   ;;  %vm460_vm0 = vmmov 0   ;;  %v461_v1 = vmov 0.0   ;;  %v66_v2 = vld [vmem:[#allocation6] sm:$0xff] }
  0x35   :  { %374 = vmatprep.subr.bf16.mxu0 %v459_v0  ;;  %377 = vmatprep.subr.bf16.mxu1 %v459_v0  ;;  %v67_v3 = vld [vmem:[#allocation6 + $0x8] sm:$0xff]  ;;  %v63_v4 = vld [vmem:[%s577_s4] sm:$0xff]  ;;  %v64_v6 = vld [vmem:[%s577_s4 + $0x8] sm:$0xff]  ;;  %vm68_vm1 = vcmask 130048   ;;  %vm221_vm2 = vcmask 1043456   ;;  %vm217_vm3 = vcmask 31744  }
  0x36   :  { %359 = vmatprep.mubr.msk.f32.mxu0 %vm460_vm0, %v461_v1  ;;  %366 = vmatprep.mubr.msk.f32.mxu1 %vm460_vm0, %v461_v1  ;;  %v375_v5 = vpack.c.bf16 %v67_v3, %v66_v2  ;;  %v378_v7 = vpack.c.bf16 %v64_v6, %v63_v4  ;;  %v65_v8 = vld [vmem:[#allocation4] sm:$0xff]  ;;  %vm313_vm4 = vcmask 261120   ;;  %s346_s26 = sld [smem:[#allocation3 + $0x2]]  ;;  %vm331_vm5 = vcmask 7168  }
  0x37   :  { %v62_v9 = vld [vmem:[%s574_s1] sm:$0xff] }
  0x38   :  { %376 = vmatpush3.bf16.msra.mxu0 %v375_v5  ;;  %379 = vmatpush3.bf16.msra.mxu1 %v378_v7  ;;  %v216_v10 = vld [vmem:[%s579_s6] sm:$0xf] }
  0x39   :  { %369 = vmatprep.subr.mxu0 %v461_v1  ;;  %v215_v11 = vld [vmem:[%s576_s3] sm:$0xff]  ;;  %s317_s3 = sld [smem:[#allocation3]] }
  0x3a   :  { %v343_v18 = vld [vmem:[%s580_s7] ss:$0 sm:$0xff]  ;;  %s345_s7 = sld [smem:[#allocation3 + $0x1]] }
  0x3b   :  { %360 = vmatmul.mubr.msk.f32.vlgmr.msra.gmra.mrb[0].mxu0 %vm68_vm1, %v65_v8  ;;  %367 = vmatmul.mubr.msk.f32.vlgmr.msra.gmra.mrb[0].mxu1 %vm68_vm1, %v62_v9  ;;  %v344_v22 = vld [vmem:[%s581_s8] ss:$0 sm:$0xff] }
  0x3c   :  { %370 = vmatpush3.msk.msra.mxu0 %vm221_vm2, %v216_v10  ;;  %371 = vmatprep.mubr.msk.f32.mxu0 %vm460_vm0, %v461_v1  ;;  %v329_v35 = vstv %s346_s26 }
  0x3f   :  { %372 = vmatmul.mubr.msk.f32.vlgmr.msra.gmra.mrb[2].mxu0 %vm217_vm3, %v215_v11  ;;  %v318_v26 = vstv %s317_s3 }
  0x40   :  { %v326_v33 = vstv %s345_s7 }
 0x10e   :  { %v138_v12 = vpop.f32.mrb[0].mxu0  ;;  %v211_v14 = vpop.f32.mrb[0].mxu1 }
 0x10f   :  { %v361_v13 = vpop.f32.mrb[1].mxu0  ;;  %v212_v15 = vadd.f32 %v211_v14, %v138_v12  ;;  %v368_v16 = vpop.f32.mrb[1].mxu1 }
 0x112   :  { %v291_v17 = vpop.f32.mrb[2].mxu0 }
 0x113   :  { %v295_v19 = vadd.f32 %v291_v17, %v212_v15  ;;  %v373_v20 = vpop.f32.mrb[3].mxu0 }
 0x115   :  { %v303_v21 = vadd.f32 %v343_v18, %v295_v19 }
 0x117   :  { %v304_v23 = vmax.f32 %v303_v21, 0.0 }
 0x119   :  { %v312_v24 = vmul.f32 %v344_v22, %v304_v23 }
 0x11b   :  { %v314_v25 = vsel %vm313_vm4, %v312_v24, 0.0 }
 0x11c   :  { %315 = vadd.xlane.f32.xlu0 %v314_v25 }
 0x1a9   :  { %v316_v27 = vpop.xlane.xlu0 %315 }
 0x1aa   :  { %v319_v28 = vadd.f32 %v318_v26, %v316_v27 }
 0x1ac   :  { %v320_v29 = vsub.f32 0.0, %v319_v28 }
 0x1ae   :  { %v321_v30 = vmul.f32 1.442695, %v320_v29 }
 0x1b0   :  { %388 = vpow2.f32 %v321_v30 }
 0x1ba   :  { %v389_v31 = vpop.eup %388 }
 0x1bb   :  { %v323_v32 = vadd.f32 1.0, %v389_v31 }
 0x1bd   :  { %390 = vrcp.f32 %v323_v32 }
 0x1c7   :  { %v391_v34 = vpop.eup %390 }
 0x1c8   :  { %v327_v36 = vmul.f32 %v391_v34, %v326_v33 }
 0x1ca   :  { %v330_v37 = vadd.f32 %v329_v35, %v327_v36 }
 0x1cc   :  { %332 = vst.msk [vmem:[%s582_s9] sm:$0xff] %vm331_vm5, %v330_v37 }
 0x1cd   :  { %337 = vsyncpa [#allocation5], 1 }
 0x1ce   :  { %338 = vsyncpa [#allocation7], 1 }

</bundles_post_ra>
